<compile_context>
chip_gen: v6e
topology: v6e:2x2x1
jax: 0.10.0
libtpu: 0.0.40
codegen_flags: <defaults>
</compile_context>

<pallas_src>
import jax
import jax.numpy as jnp
from jax import lax
from jax.experimental import pallas as pl
from jax.experimental.pallas import tpu as pltpu


def _round_up(x: int, m: int) -> int:
    return ((x + m - 1) // m) * m


def _pick_tiles(T: int, B: int, D: int, block_t: int, block_b: int,
                budget_bytes: int = 24 * 1024 * 1024):
    """Pick (tT, tB) so double-buffered blocks + tri fit comfortably in VMEM."""
    tT = min(_round_up(T, 8), block_t)
    tB = min(_round_up(B, 128), block_b)

    def est(t, b):
        # 2x double-buffered (obs + mask + out) blocks + bf16 tri + f32 temporaries.
        return 4 * 2 * (D * t * b + 2 * t * b) + 2 * t * t + 8 * t * b

    while est(tT, tB) > budget_bytes and tB > 128:
        tB //= 2
    while est(tT, tB) > budget_bytes and tT > 8:
        tT //= 2
    return tT, tB


def _baseline_forward_kernel(obs_ref, mask_ref, w_ref, out_ref, carry_ref):
    # obs_ref:   (D, tT, tB) f32 VMEM   observations (D outer, B on lanes)
    # mask_ref:  (tT, tB)    f32 VMEM   episode mask
    # w_ref:     (2*D + 4,)  f32 SMEM   nn.Linear(feature_size, 1).weight, flat
    # out_ref:   (tT, tB)    f32 VMEM   lane-dense baseline values
    # carry_ref: (1, tB)     f32 VMEM   running per-column mask sum (across T blocks)
    D, tT, tB = obs_ref.shape
    ti = pl.program_id(1)

    mask = mask_ref[...]                                   # (tT, tB)

    @pl.when(ti == 0)
    def _():
        carry_ref[...] = jnp.zeros_like(carry_ref)

    # Block cumulative sum over time as a lower-triangular matmul on the MXU.
    # tri/mask entries are exactly 0/1 -> bf16 inputs + f32 accumulation is exact.
    row = lax.broadcasted_iota(jnp.int32, (tT, tT), 0)
    col = lax.broadcasted_iota(jnp.int32, (tT, tT), 1)
    tri = (col <= row).astype(jnp.bfloat16)
    cs = jnp.dot(tri, mask.astype(jnp.bfloat16),
                 preferred_element_type=jnp.float32)       # (tT, tB)
    cs = cs + carry_ref[...]                               # carry from earlier T blocks
    carry_ref[...] = cs[tT - 1:tT, :]                      # new running column sums

    al = (cs * mask) / 100.0                               # cumsum(mask)*mask / 100

    # Handcrafted time features: Horner form with scalar weights from SMEM.
    w_al = w_ref[2 * D + 0]
    w_al2 = w_ref[2 * D + 1]
    w_al3 = w_ref[2 * D + 2]
    w_one = w_ref[2 * D + 3]
    v = mask * w_one + al * (w_al + al * (w_al2 + al * w_al3))

    # Observation features: unrolled VPU FMAs over the (small, static) D axis,
    # fully vectorized over the 128-lane batch axis. om = obs*mask is formed
    # explicitly so the result is exact for any mask values.
    for d in range(D):
        om = obs_ref[d] * mask                             # (tT, tB)
        v = v + om * (w_ref[d] + om * w_ref[D + d])

    out_ref[...] = v.astype(out_ref.dtype)


def linear_feature_baseline_forward(observations, mask, weight,
                                    *, block_t=256, block_b=512):
    """Pallas forward pass of LinearFeatureBaseline.

    observations: (T, B, D) float32
    mask:         (T, B)    float32 (episode mask, 0/1)
    weight:       (1, 2*D+4) float32  (nn.Linear(feature_size, 1, bias=False).weight)
    returns value: (T, B, 1) float32
    """
    T, B, D = observations.shape
    F = 2 * D + 4
    assert weight.shape == (1, F), weight.shape

    # Lane-friendly layout: D -> outer axis, time -> sublanes, batch -> lanes.
    obs_dtb = jnp.transpose(observations.astype(jnp.float32), (2, 0, 1))  # (D, T, B)
    mask_f = mask.astype(jnp.float32)
    w_flat = weight.astype(jnp.float32).reshape(F)

    tT, tB = _pick_tiles(T, B, D, block_t, block_b)
    Tp = _round_up(T, tT)
    Bp = _round_up(B, tB)
    if (Tp, Bp) != (T, B):
        obs_dtb = jnp.pad(obs_dtb, ((0, 0), (0, Tp - T), (0, Bp - B)))
        mask_f = jnp.pad(mask_f, ((0, Tp - T), (0, Bp - B)))

    n_b, n_t = Bp // tB, Tp // tT

    flops = 2 * tT * Tp * Bp + (6 * D + 12) * Tp * Bp
    bytes_accessed = 4 * ((D + 2) * Tp * Bp + F)

    out_padded = pl.pallas_call(
        _baseline_forward_kernel,
        out_shape=jax.ShapeDtypeStruct((Tp, Bp), jnp.float32),
        grid_spec=pltpu.PrefetchScalarGridSpec(
            num_scalar_prefetch=0,
            grid=(n_b, n_t),  # B blocks (parallel), T blocks (sequential carry)
            in_specs=[
                pl.BlockSpec((D, tT, tB), lambda bi, ti: (0, ti, bi)),
                pl.BlockSpec((tT, tB), lambda bi, ti: (ti, bi)),
                pl.BlockSpec(memory_space=pltpu.MemorySpace.SMEM),  # weights
            ],
            out_specs=pl.BlockSpec((tT, tB), lambda bi, ti: (ti, bi)),
            scratch_shapes=[pltpu.VMEM((1, tB), jnp.float32)],
        ),
        compiler_params=pltpu.CompilerParams(
            dimension_semantics=("parallel", "arbitrary"),
            vmem_limit_bytes=32 * 1024 * 1024,
        ),
        cost_estimate=pl.CostEstimate(
            flops=flops, transcendentals=Tp * Bp, bytes_accessed=bytes_accessed),
    )(obs_dtb, mask_f, w_flat)

    # Lane-dense (T, B) kernel output; trailing unit axis added here for free.
    return out_padded[:T, :B][:, :, None]


def _reference_forward(observations, mask, weight):
    """Pure-JAX transcription of the PyTorch forward for verification."""
    ones = mask[:, :, None]
    obs = observations * ones
    cum_sum = jnp.cumsum(ones, axis=0) * ones
    al = cum_sum / 100.0
    feats = jnp.concatenate([obs, obs ** 2, al, al ** 2, al ** 3, ones], axis=2)
    return feats @ weight.T   # (T, B, 1)


if __name__ == "__main__":
    T, B, D = 8, 2, 6          # seq=8, batch=2, input_size=6 -> feature_size=16
    F = 2 * D + 4

    key = jax.random.PRNGKey(0)
    k_obs, k_w = jax.random.split(key)

    observations = jax.random.normal(k_obs, (T, B, D), dtype=jnp.float32)
    # Episode mask: episode 0 runs full length, episode 1 terminates at t=5.
    mask = jnp.ones((T, B), dtype=jnp.float32)
    mask = mask.at[5:, 1].set(0.0)

    # nn.Linear(feature_size, 1, bias=False).weight has shape (1, F). The module
    # zero-inits it (trivially zero forward); use a non-zero weight to exercise
    # the kernel (as after fit()).
    weight = 0.1 * jax.random.normal(k_w, (1, F), dtype=jnp.float32)

    fwd = jax.jit(linear_feature_baseline_forward)
    value = jax.block_until_ready(fwd(observations, mask, weight))

    ref = _reference_forward(observations, mask, weight)
    assert value.shape == (T, B, 1)
    err = jnp.max(jnp.abs(value - ref))
    assert jnp.allclose(value, ref, atol=1e-5, rtol=1e-5), f"max err {err}"

    print("KERNEL_OK")
</pallas_src>

<mosaic_0001>
module attributes {stable_mosaic.version = 11 : i64} {
  func.func @_baseline_forward_kernel(%arg0: i32, %arg1: i32, %arg2: memref<6x8x128xf32, #tpu.memory_space<vmem>>, %arg3: memref<8x128xf32, #tpu.memory_space<vmem>>, %arg4: memref<16xf32, #tpu.memory_space<smem>>, %arg5: memref<8x128xf32, #tpu.memory_space<vmem>>, %arg6: memref<1x128xf32, #tpu.memory_space<vmem>>) attributes {dimension_semantics = [#tpu.dimension_semantics<parallel>, #tpu.dimension_semantics<arbitrary>], iteration_bounds = array<i64: 1, 1>, scalar_prefetch = 0 : i64, scratch_operands = 1 : i64, tpu.core_type = #tpu.core_type<tc>, window_params = [{transform_indices = @transform_0, window_bounds = array<i64: 6, 8, 128>}, {transform_indices = @transform_1, window_bounds = array<i64: 8, 128>}, {transform_indices = @transform_2, window_bounds = array<i64: 16>}, {transform_indices = @transform_3, window_bounds = array<i64: 8, 128>}]} {
    %c0 = arith.constant 0 : index
    %c0_0 = arith.constant 0 : index
    %0 = vector.load %arg3[%c0, %c0_0] : memref<8x128xf32, #tpu.memory_space<vmem>>, vector<8x128xf32>
    %c0_i32 = arith.constant 0 : i32
    %1 = arith.cmpi eq, %arg1, %c0_i32 : i32
    %2 = arith.extui %1 : i1 to i32
    %c0_i32_1 = arith.constant 0 : i32
    %3 = arith.cmpi ne, %2, %c0_i32_1 : i32
    scf.if %3 {
      %cst_28 = arith.constant 0.000000e+00 : f32
      %102 = vector.broadcast %cst_28 : f32 to vector<1x128xf32>
      %c0_29 = arith.constant 0 : index
      %c0_30 = arith.constant 0 : index
      %103 = vector.load %arg6[%c0_29, %c0_30] : memref<1x128xf32, #tpu.memory_space<vmem>>, vector<1x128xf32>
      tpu.vector_store %arg6[%c0_29, %c0_30], %102 {strides = array<i32>} : memref<1x128xf32, #tpu.memory_space<vmem>>, vector<1x128xf32>,
    } else {
    }
    %4 = tpu.iota {dimensions = array<i32: 0>} : vector<8x8xi32>
    %5 = tpu.iota {dimensions = array<i32: 1>} : vector<8x8xi32>
    %6 = arith.cmpi sle, %5, %4 : vector<8x8xi32>
    %7 = arith.extui %6 : vector<8x8xi1> to vector<8x8xi32>
    %8 = arith.sitofp %7 : vector<8x8xi32> to vector<8x8xf32>
    %9 = arith.truncf %8 : vector<8x8xf32> to vector<8x8xbf16>
    %10 = arith.truncf %0 : vector<8x128xf32> to vector<8x128xbf16>
    %cst = arith.constant dense<0.000000e+00> : vector<8x128xf32>
    %11 = tpu.matmul %9, %10, %cst {dimension_numbers = #tpu.dot_dimension_numbers<[1], [0], [0], [1], [0, 0, 1, 1], [], []>} : vector<8x8xbf16>, vector<8x128xbf16>, vector<8x128xf32> -> vector<8x128xf32>
    %c0_2 = arith.constant 0 : index
    %c0_3 = arith.constant 0 : index
    %12 = vector.load %arg6[%c0_2, %c0_3] : memref<1x128xf32, #tpu.memory_space<vmem>>, vector<1x128xf32>
    %13 = vector.broadcast %12 : vector<1x128xf32> to vector<8x128xf32>
    %14 = arith.addf %11, %13 : vector<8x128xf32>
    %15 = vector.extract_strided_slice %14 {offsets = [7, 0], sizes = [1, 128], strides = [1, 1]} : vector<8x128xf32> to vector<1x128xf32>
    %c0_4 = arith.constant 0 : index
    %c0_5 = arith.constant 0 : index
    %16 = vector.load %arg6[%c0_4, %c0_5] : memref<1x128xf32, #tpu.memory_space<vmem>>, vector<1x128xf32>
    tpu.vector_store %arg6[%c0_4, %c0_5], %15 {strides = array<i32>} : memref<1x128xf32, #tpu.memory_space<vmem>>, vector<1x128xf32>,
    %17 = arith.mulf %14, %0 : vector<8x128xf32>
    %cst_6 = arith.constant 1.000000e+02 : f32
    %18 = vector.broadcast %cst_6 : f32 to vector<8x128xf32>
    %19 = arith.divf %17, %18 : vector<8x128xf32>
    %c12 = arith.constant 12 : index
    %20 = memref.load %arg4[%c12] : memref<16xf32, #tpu.memory_space<smem>>
    %c13 = arith.constant 13 : index
    %21 = memref.load %arg4[%c13] : memref<16xf32, #tpu.memory_space<smem>>
    %c14 = arith.constant 14 : index
    %22 = memref.load %arg4[%c14] : memref<16xf32, #tpu.memory_space<smem>>
    %c15 = arith.constant 15 : index
    %23 = memref.load %arg4[%c15] : memref<16xf32, #tpu.memory_space<smem>>
    %24 = vector.broadcast %23 : f32 to vector<8x128xf32>
    %25 = arith.mulf %0, %24 : vector<8x128xf32>
    %26 = vector.broadcast %22 : f32 to vector<8x128xf32>
    %27 = arith.mulf %19, %26 : vector<8x128xf32>
    %28 = vector.broadcast %21 : f32 to vector<8x128xf32>
    %29 = arith.addf %28, %27 : vector<8x128xf32>
    %30 = arith.mulf %19, %29 : vector<8x128xf32>
    %31 = vector.broadcast %20 : f32 to vector<8x128xf32>
    %32 = arith.addf %31, %30 : vector<8x128xf32>
    %33 = arith.mulf %19, %32 : vector<8x128xf32>
    %34 = arith.addf %25, %33 : vector<8x128xf32>
    %c0_7 = arith.constant 0 : index
    %c0_8 = arith.constant 0 : index
    %c0_9 = arith.constant 0 : index
    %35 = vector.load %arg2[%c0_7, %c0_8, %c0_9] : memref<6x8x128xf32, #tpu.memory_space<vmem>>, vector<1x8x128xf32>
    %36 = vector.shape_cast %35 : vector<1x8x128xf32> to vector<8x128xf32>
    %37 = arith.mulf %36, %0 : vector<8x128xf32>
    %c0_10 = arith.constant 0 : index
    %38 = memref.load %arg4[%c0_10] : memref<16xf32, #tpu.memory_space<smem>>
    %c6 = arith.constant 6 : index
    %39 = memref.load %arg4[%c6] : memref<16xf32, #tpu.memory_space<smem>>
    %40 = vector.broadcast %39 : f32 to vector<8x128xf32>
    %41 = arith.mulf %37, %40 : vector<8x128xf32>
    %42 = vector.broadcast %38 : f32 to vector<8x128xf32>
    %43 = arith.addf %42, %41 : vector<8x128xf32>
    %44 = arith.mulf %37, %43 : vector<8x128xf32>
    %45 = arith.addf %34, %44 : vector<8x128xf32>
    %c1 = arith.constant 1 : index
    %c0_11 = arith.constant 0 : index
    %c0_12 = arith.constant 0 : index
    %46 = vector.load %arg2[%c1, %c0_11, %c0_12] : memref<6x8x128xf32, #tpu.memory_space<vmem>>, vector<1x8x128xf32>
    %47 = vector.shape_cast %46 : vector<1x8x128xf32> to vector<8x128xf32>
    %48 = arith.mulf %47, %0 : vector<8x128xf32>
    %c1_13 = arith.constant 1 : index
    %49 = memref.load %arg4[%c1_13] : memref<16xf32, #tpu.memory_space<smem>>
    %c7 = arith.constant 7 : index
    %50 = memref.load %arg4[%c7] : memref<16xf32, #tpu.memory_space<smem>>
    %51 = vector.broadcast %50 : f32 to vector<8x128xf32>
    %52 = arith.mulf %48, %51 : vector<8x128xf32>
    %53 = vector.broadcast %49 : f32 to vector<8x128xf32>
    %54 = arith.addf %53, %52 : vector<8x128xf32>
    %55 = arith.mulf %48, %54 : vector<8x128xf32>
    %56 = arith.addf %45, %55 : vector<8x128xf32>
    %c2 = arith.constant 2 : index
    %c0_14 = arith.constant 0 : index
    %c0_15 = arith.constant 0 : index
    %57 = vector.load %arg2[%c2, %c0_14, %c0_15] : memref<6x8x128xf32, #tpu.memory_space<vmem>>, vector<1x8x128xf32>
    %58 = vector.shape_cast %57 : vector<1x8x128xf32> to vector<8x128xf32>
    %59 = arith.mulf %58, %0 : vector<8x128xf32>
    %c2_16 = arith.constant 2 : index
    %60 = memref.load %arg4[%c2_16] : memref<16xf32, #tpu.memory_space<smem>>
    %c8 = arith.constant 8 : index
    %61 = memref.load %arg4[%c8] : memref<16xf32, #tpu.memory_space<smem>>
    %62 = vector.broadcast %61 : f32 to vector<8x128xf32>
    %63 = arith.mulf %59, %62 : vector<8x128xf32>
    %64 = vector.broadcast %60 : f32 to vector<8x128xf32>
    %65 = arith.addf %64, %63 : vector<8x128xf32>
    %66 = arith.mulf %59, %65 : vector<8x128xf32>
    %67 = arith.addf %56, %66 : vector<8x128xf32>
    %c3 = arith.constant 3 : index
    %c0_17 = arith.constant 0 : index
    %c0_18 = arith.constant 0 : index
    %68 = vector.load %arg2[%c3, %c0_17, %c0_18] : memref<6x8x128xf32, #tpu.memory_space<vmem>>, vector<1x8x128xf32>
    %69 = vector.shape_cast %68 : vector<1x8x128xf32> to vector<8x128xf32>
    %70 = arith.mulf %69, %0 : vector<8x128xf32>
    %c3_19 = arith.constant 3 : index
    %71 = memref.load %arg4[%c3_19] : memref<16xf32, #tpu.memory_space<smem>>
    %c9 = arith.constant 9 : index
    %72 = memref.load %arg4[%c9] : memref<16xf32, #tpu.memory_space<smem>>
    %73 = vector.broadcast %72 : f32 to vector<8x128xf32>
    %74 = arith.mulf %70, %73 : vector<8x128xf32>
    %75 = vector.broadcast %71 : f32 to vector<8x128xf32>
    %76 = arith.addf %75, %74 : vector<8x128xf32>
    %77 = arith.mulf %70, %76 : vector<8x128xf32>
    %78 = arith.addf %67, %77 : vector<8x128xf32>
    %c4 = arith.constant 4 : index
    %c0_20 = arith.constant 0 : index
    %c0_21 = arith.constant 0 : index
    %79 = vector.load %arg2[%c4, %c0_20, %c0_21] : memref<6x8x128xf32, #tpu.memory_space<vmem>>, vector<1x8x128xf32>
    %80 = vector.shape_cast %79 : vector<1x8x128xf32> to vector<8x128xf32>
    %81 = arith.mulf %80, %0 : vector<8x128xf32>
    %c4_22 = arith.constant 4 : index
    %82 = memref.load %arg4[%c4_22] : memref<16xf32, #tpu.memory_space<smem>>
    %c10 = arith.constant 10 : index
    %83 = memref.load %arg4[%c10] : memref<16xf32, #tpu.memory_space<smem>>
    %84 = vector.broadcast %83 : f32 to vector<8x128xf32>
    %85 = arith.mulf %81, %84 : vector<8x128xf32>
    %86 = vector.broadcast %82 : f32 to vector<8x128xf32>
    %87 = arith.addf %86, %85 : vector<8x128xf32>
    %88 = arith.mulf %81, %87 : vector<8x128xf32>
    %89 = arith.addf %78, %88 : vector<8x128xf32>
    %c5 = arith.constant 5 : index
    %c0_23 = arith.constant 0 : index
    %c0_24 = arith.constant 0 : index
    %90 = vector.load %arg2[%c5, %c0_23, %c0_24] : memref<6x8x128xf32, #tpu.memory_space<vmem>>, vector<1x8x128xf32>
    %91 = vector.shape_cast %90 : vector<1x8x128xf32> to vector<8x128xf32>
    %92 = arith.mulf %91, %0 : vector<8x128xf32>
    %c5_25 = arith.constant 5 : index
    %93 = memref.load %arg4[%c5_25] : memref<16xf32, #tpu.memory_space<smem>>
    %c11 = arith.constant 11 : index
    %94 = memref.load %arg4[%c11] : memref<16xf32, #tpu.memory_space<smem>>
    %95 = vector.broadcast %94 : f32 to vector<8x128xf32>
    %96 = arith.mulf %92, %95 : vector<8x128xf32>
    %97 = vector.broadcast %93 : f32 to vector<8x128xf32>
    %98 = arith.addf %97, %96 : vector<8x128xf32>
    %99 = arith.mulf %92, %98 : vector<8x128xf32>
    %100 = arith.addf %89, %99 : vector<8x128xf32>
    %c0_26 = arith.constant 0 : index
    %c0_27 = arith.constant 0 : index
    %101 = vector.load %arg5[%c0_26, %c0_27] : memref<8x128xf32, #tpu.memory_space<vmem>>, vector<8x128xf32>
    tpu.vector_store %arg5[%c0_26, %c0_27], %100 {strides = array<i32>} : memref<8x128xf32, #tpu.memory_space<vmem>>, vector<8x128xf32>,
    return
  }
  func.func @transform_0(%arg0: i32, %arg1: i32) -> (i32, i32, i32) {
    %c0_i32 = arith.constant 0 : i32
    %c0_i32_0 = arith.constant 0 : i32
    return %c0_i32, %arg1, %arg0 : i32, i32, i32
  }
  func.func @transform_1(%arg0: i32, %arg1: i32) -> (i32, i32) {
    %c0_i32 = arith.constant 0 : i32
    return %arg1, %arg0 : i32, i32
  }
  func.func @transform_2(%arg0: i32, %arg1: i32) -> i32 {
    %c0_i32 = arith.constant 0 : i32
    %c0_i32_0 = arith.constant 0 : i32
    return %c0_i32 : i32
  }
  func.func @transform_3(%arg0: i32, %arg1: i32) -> (i32, i32) {
    %c0_i32 = arith.constant 0 : i32
    return %arg1, %arg0 : i32, i32
  }
}

</mosaic_0001>

<bundles_post_ra>
// kernel: linear_feature_baseline_forward.1
= control target key start
LH: loop header
LB: loop body
LE: loop exit
PB: predicated region body
PF: predicated region fallthrough
CT: control target
= control target key end

     0   :  { %8 = vsyncpa [#allocation4], 0  ;;  %s343_s0 = inlined_call_operand.vmem [shape: f32[6,8,128], index: 0, kind: input, shape index: {}]   ;;  %s344_s1 = inlined_call_operand.vmem [shape: f32[8,128], index: 1, kind: input, shape index: {}]   ;;  %s345_s2 = inlined_call_operand.vmem [shape: f32[16], index: 2, kind: input, shape index: {}]   ;;  %s346_s3 = inlined_call_operand.vmem [shape: f32[8,128], index: 3, kind: output, shape index: {}]  }
   0x1   :  { %s19_s14 = sshll.u32 %s345_s2, 4  ;;  %s20_s14 = int_to_ptr.vmem [resolvable:$true] %s19_s14 }
   0x2   :  { %s222_s15 = scalar_lea.vmem %s20_s14, 16  ;;  %p227_p1 = scmp.lt.s32.totalorder %s20_s14, %s20_s14 }
   0x3   :  { %p223_p0 = scmp.ne.s32.totalorder %s20_s14, %s222_s15  ;;  %p228_p2 = scmp.lt.s32.totalorder %s222_s15, %s222_s15 }
   0x5   :  { %p229_p3 = por %p228_p2, %p227_p1 }
   0x7   :  { %p230_p4 = pnand %p229_p3, %p223_p0 }
   0x9   :  { %233 = shalt.err (!%p230_p4)
}
   0xa   :  { %s236_s16 = smov [#allocation3]  }
   0xb   :  { %22 = dma.vmem_to_smem %s20_s14, 16, %s236_s16, [#allocation4]  }
   0xc   :  { %234 = dma.done.wait [#allocation4], 16  }
   0xd   :  { %235 = vsyncadd [#allocation4], 4294967280 }
   0xe   :  { %26 = sfence }
   0xf   :  { %v34_v0 = vlaneseq  ;;  %v265_v1 = vld [vmem:[%s344_s1] sm:$0xff]  ;;  %vm54_vm0 = vcmask 1043456   ;;  %v237_v2 = vmov 0.0   ;;  %vm238_vm1 = vmmov 0   ;;  %s269_s1 = sld [smem:[#allocation3 + $0xe]]  ;;  %v196_v13 = vld [vmem:[%s343_s0 + $0x8] sm:$0xff] }
  0x10   :  { %213 = vmatprep.subr.bf16.mxu0 %v237_v2  ;;  %33 = vst [vmem:[#allocation2] sm:$0x1] %v237_v2  ;;  %v42_v3 = vpack.c.bf16 %v265_v1, %v265_v1  ;;  %215 = vmatprep.mubr.msk.bf16.mxu0 %vm238_vm1, %v237_v2  ;;  %vm50_vm3 = vcmask 64512   ;;  %s271_s2 = sld [smem:[#allocation3 + $0xd]]  ;;  %v117_v11 = vld [vmem:[%s343_s0] sm:$0xff]  ;;  %v199_v19 = vld [vmem:[%s343_s0 + $0x10] sm:$0xff]  ;;  %v129_v22 = vmul.f32 %v196_v13, %v265_v1 }
  0x11   :  { %v35_v4 = vshrl.u32 %v34_v0, 7  ;;  %v37_v5 = vand.u32 127, %v34_v0  ;;  %s273_s19 = sld [smem:[#allocation3 + $0xc]]  ;;  %v118_v16 = vmul.f32 %v117_v11, %v265_v1  ;;  %v202_v25 = vld [vmem:[%s343_s0 + $0x18] sm:$0xff]  ;;  %v140_v29 = vmul.f32 %v199_v19, %v265_v1  ;;  %v205_v32 = vld [vmem:[%s343_s0 + $0x20] sm:$0xff]  ;;  %v208_v40 = vld [vmem:[%s343_s0 + $0x28] sm:$0xff] }
  0x12   :  { %v56_v6 = vsel %vm54_vm0, %v42_v3, 0  ;;  %s275_s20 = sld [smem:[#allocation3 + $0x6]]  ;;  %v151_v36 = vmul.f32 %v202_v25, %v265_v1  ;;  %v162_v44 = vmul.f32 %v205_v32, %v265_v1  ;;  %v173_v51 = vmul.f32 %v208_v40, %v265_v1 }
  0x13   :  { %vm38_vm2 = vcmp.le.s32.totalorder %v37_v5, %v35_v4  ;;  %214 = vmatpush3.bf16.msra.mxu0 %v56_v6  ;;  %s277_s21 = sld [smem:[#allocation3 + $0xf]] }
  0x14   :  { %v188_v7 = vsel %vm38_vm2, 1.0, %v237_v2  ;;  %s279_s22 = sld [smem:[#allocation3 + $0x7]] }
  0x15   :  { %v41_v8 = vpack.c.bf16 %v188_v7, %v188_v7  ;;  %s281_s23 = sld [smem:[#allocation3]]  ;;  %v108_v17 = vstv %s269_s1 }
  0x16   :  { %s286_s26 = sld [smem:[#allocation3 + $0x8]]  ;;  %v110_v23 = vstv %s271_s2 }
  0x17   :  { %216 = vmatmul.mubr.msk.bf16.vlgmr.msra.gmra.mxu0 %vm50_vm3, %v41_v8  ;;  %v189_v9 = vld [vmem:[#allocation2] ss:$0 sm:$0xff]  ;;  %s288_s27 = sld [smem:[#allocation3 + $0x1]]  ;;  %v113_v37 = vstv %s273_s19 }
  0x18   :  { %s293_s30 = sld [smem:[#allocation3 + $0x9]]  ;;  %v121_v18 = vstv %s275_s20 }
  0x19   :  { %s297_s4 = sld [smem:[#allocation3 + $0x2]]  ;;  %v122_v28 = vmul.f32 %v121_v18, %v118_v16  ;;  %v106_v33 = vstv %s277_s21 }
  0x1a   :  { %s304_s7 = sld [smem:[#allocation3 + $0xa]]  ;;  %v132_v24 = vstv %s279_s22  ;;  %v107_v45 = vmul.f32 %v106_v33, %v265_v1 }
  0x1b   :  { %s307_s8 = sld [smem:[#allocation3 + $0x3]]  ;;  %v123_v30 = vstv %s281_s23  ;;  %v133_v35 = vmul.f32 %v132_v24, %v129_v22 }
  0x1c   :  { %s314_s11 = sld [smem:[#allocation3 + $0xb]]  ;;  %v143_v31 = vstv %s286_s26  ;;  %v124_v42 = vadd.f32 %v123_v30, %v122_v28 }
  0x1d   :  { %s322_s14 = sld [smem:[#allocation3 + $0x4]]  ;;  %v134_v38 = vstv %s288_s27  ;;  %v144_v43 = vmul.f32 %v143_v31, %v140_v29 }
  0x1e   :  { %v154_v39 = vstv %s293_s30  ;;  %s209_s17 = sld [smem:[#allocation3 + $0x5]]  ;;  %v135_v49 = vadd.f32 %v134_v38, %v133_v35  ;;  %v125_v55 = vmul.f32 %v124_v42, %v118_v16 }
  0x1f   :  { %v145_v46 = vstv %s297_s4  ;;  %v155_v50 = vmul.f32 %v154_v39, %v151_v36 }
  0x20   :  { %v165_v47 = vstv %s304_s7  ;;  %v146_v56 = vadd.f32 %v145_v46, %v144_v43  ;;  %v136_v60 = vmul.f32 %v135_v49, %v129_v22 }
  0x21   :  { %v156_v52 = vstv %s307_s8  ;;  %v166_v57 = vmul.f32 %v165_v47, %v162_v44 }
  0x22   :  { %v176_v53 = vstv %s314_s11  ;;  %v157_v61 = vadd.f32 %v156_v52, %v155_v50  ;;  %v147_v2 = vmul.f32 %v146_v56, %v140_v29 }
  0x23   :  { %v167_v58 = vstv %s322_s14  ;;  %v177_v62 = vmul.f32 %v176_v53, %v173_v51 }
  0x24   :  { %v178_v63 = vstv %s209_s17  ;;  %v168_v3 = vadd.f32 %v167_v58, %v166_v57  ;;  %v158_v5 = vmul.f32 %v157_v61, %v151_v36 }
  0x25   :  { %v179_v6 = vadd.f32 %v178_v63, %v177_v62 }
  0xd7   :  { %v92_v10 = vpop.f32.mrf.mxu0 }
  0xd8   :  { %v93_v12 = vadd.f32 %v189_v9, %v92_v10  ;;  %v180_v9 = vmul.f32 %v179_v6, %v173_v51 }
  0xd9   :  { %v217_v14 = vpop.f32.mrf.mxu0 }
  0xda   :  { %98 = vst [vmem:[#allocation2 - $0x7] sm:$0x80] %v93_v12  ;;  %v99_v15 = vmul.f32 %v93_v12, %v265_v1  ;;  %v169_v1 = vmul.f32 %v168_v3, %v162_v44 }
  0xdb   :  { %v95_v20 = vpop.f32.mrf.mxu0 }
  0xdc   :  { %v101_v21 = vmul.f32 0.01, %v99_v15 }
  0xdd   :  { %v218_v26 = vpop.f32.mrf.mxu0 }
  0xde   :  { %v109_v27 = vmul.f32 %v108_v17, %v101_v21 }
  0xe0   :  { %v111_v34 = vadd.f32 %v110_v23, %v109_v27 }
  0xe2   :  { %v112_v41 = vmul.f32 %v111_v34, %v101_v21 }
  0xe4   :  { %v114_v48 = vadd.f32 %v113_v37, %v112_v41 }
  0xe6   :  { %v115_v54 = vmul.f32 %v114_v48, %v101_v21 }
  0xe8   :  { %v116_v59 = vadd.f32 %v115_v54, %v107_v45 }
  0xea   :  { %v126_v0 = vadd.f32 %v125_v55, %v116_v59 }
  0xec   :  { %v137_v4 = vadd.f32 %v136_v60, %v126_v0 }
  0xee   :  { %v148_v7 = vadd.f32 %v147_v2, %v137_v4 }
  0xf0   :  { %v159_v8 = vadd.f32 %v158_v5, %v148_v7 }
  0xf2   :  { %v170_v10 = vadd.f32 %v169_v1, %v159_v8 }
  0xf4   :  { %v181_v11 = vadd.f32 %v180_v9, %v170_v10 }
  0xf6   :  { %182 = vst [vmem:[%s346_s3] sm:$0xff] %v181_v11 }
  0xf7   :  { %187 = vsyncpa [#allocation4], 1 }

</bundles_post_ra>
